<compile_context>
chip_gen: v5e
topology: v5e:2x2
jax: 0.10.0
libtpu: 0.0.40
codegen_flags: <defaults>
</compile_context>

<pallas_src>
import functools

import jax
import jax.numpy as jnp
from jax.experimental import pallas as pl
from jax.experimental.pallas import tpu as pltpu

# Model hyperparameters (num_layers = 3 -> [in->hid, hid->hid, hid->out])
IN_CHANNELS = 32
HIDDEN_CHANNELS = 64
OUT_CHANNELS = 1
NUM_LAYERS = 3
DROPOUT = 0.5  # inference mode: dropout is a no-op
# TODO(synk): training-mode dropout (stateful PRNG mask) intentionally omitted; eval semantics only.

BATCH = 200        # number of edge pairs (deliberately ragged vs. the 128-lane tile)
DEFAULT_TM = 2048  # batch rows per grid step (lane-axis tile), multiple of 128


def _round_up(x, m):
    return (x + m - 1) // m * m


def _default_bf16_vpu():
    """True on chips with native bf16 VPU ALUs (v6e/v7x); False on v5e and older."""
    try:
        kind = jax.devices()[0].device_kind.lower()
    except Exception:
        return True
    return not any(tag in kind for tag in ("v2", "v3", "v4", "v5"))


def link_predictor_kernel(xi_ref, xj_ref,
                          w1_ref, b1_ref,
                          w2_ref, b2_ref,
                          w3_ref, b3_ref,
                          o_ref, *, bf16_vpu):
    f32 = jnp.float32
    bf16 = jnp.bfloat16

    # Elementwise product in f32 (cheap and native on every VPU generation), then a
    # single in-kernel transpose of the small (TM, d_in) product to feature-major
    # (batch rides the 128-wide lane axis for every downstream op).
    x = xi_ref[...].astype(f32) * xj_ref[...].astype(f32)        # (TM, d_in) f32
    xt = x.T.astype(bf16)                                        # (d_in, TM) bf16

    # Layer 1: relu(W1 @ x + b1)  — MXU, f32 accumulate.
    h = jnp.dot(w1_ref[...], xt, preferred_element_type=f32) + b1_ref[...]
    if bf16_vpu:                       # v6e/v7x: ReLU on the bf16 copy (native bf16 VPU)
        h = jnp.maximum(h.astype(bf16), 0.0)
    else:                              # v5e: ReLU in f32, pack once for the MXU
        h = jnp.maximum(h, 0.0).astype(bf16)
    # (dropout is identity at inference)

    # Layer 2: relu(W2 @ h + b2)
    h = jnp.dot(w2_ref[...], h, preferred_element_type=f32) + b2_ref[...]
    if bf16_vpu:
        h = jnp.maximum(h.astype(bf16), 0.0)                     # (hid, TM) bf16
    else:
        h = jnp.maximum(h, 0.0)                                  # (hid, TM) f32

    # Output layer (hid -> 1) on the MXU (large slack): (1, hid) @ (hid, TM) keeps the
    # result lane-dense (1, TM) for an unmasked vst.
    z = jnp.dot(w3_ref[...], h, preferred_element_type=f32) + b3_ref[...]
    o_ref[...] = jax.nn.sigmoid(z)


def link_predictor(x_i, x_j, params, *, tm=DEFAULT_TM, bf16_vpu=None):
    """params: list of (W, b) in PyTorch nn.Linear layout (W: [out, in], b: [out])."""
    if bf16_vpu is None:
        bf16_vpu = _default_bf16_vpu()

    (w1, b1), (w2, b2), (w3, b3) = params
    n, d_in = x_i.shape
    d_hid = w1.shape[0]
    d_out = w3.shape[0]
    assert d_out == OUT_CHANNELS and w1.shape[1] == d_in and x_j.shape == (n, d_in)
    assert tm % 128 == 0

    # Lane tile: as large as possible, but keep >= 2 grid steps whenever the padded
    # batch spans >= 2 lane tiles so both v7x TensorCores get work (negligible extra
    # per-step overhead on single-TC v5e/v6e).
    n128 = _round_up(n, 128)
    if n128 >= 256:
        tm = min(tm, _round_up(pl.cdiv(n128, 2), 128))
    else:
        tm = min(tm, n128)
    tm = max(tm, 128)
    n_pad = _round_up(n, tm)
    grid = (n_pad // tm,)

    # Wrapper-side work is only cast + zero-pad (no transpose): bf16 inputs halve the
    # input HBM traffic; all transposition happens inside the kernel.
    pad = ((0, n_pad - n), (0, 0))
    xi_p = jnp.pad(x_i.astype(jnp.bfloat16), pad)          # (n_pad, d_in) bf16
    xj_p = jnp.pad(x_j.astype(jnp.bfloat16), pad)
    w1b = w1.astype(jnp.bfloat16)                          # (hid, in)   bf16
    w2b = w2.astype(jnp.bfloat16)                          # (hid, hid)  bf16
    b1c = b1.astype(jnp.float32).reshape(d_hid, 1)         # (hid, 1)    f32
    b2c = b2.astype(jnp.float32).reshape(d_hid, 1)
    w3_dtype = jnp.bfloat16 if bf16_vpu else jnp.float32   # match final-dot operand dtype
    w3c = w3.astype(w3_dtype).reshape(1, d_hid)            # (1, hid)
    b3c = b3.astype(jnp.float32).reshape(1, 1)             # (1, 1)      f32

    in_row_spec = pl.BlockSpec((tm, d_in), lambda i: (i, 0))

    def full_spec(shape):
        return pl.BlockSpec(shape, lambda i: tuple(0 for _ in shape))

    w3_bytes_per_elem = 2 if bf16_vpu else 4
    weight_bytes = ((w1b.size + w2b.size) * 2
                    + w3c.size * w3_bytes_per_elem
                    + (b1c.size + b2c.size + b3c.size) * 4)
    cost = pl.CostEstimate(
        flops=int(2 * n_pad * (d_in * d_hid + d_hid * d_hid + d_hid) + n_pad * d_in),
        transcendentals=int(n_pad),
        bytes_accessed=int(2 * n_pad * d_in * 2 + weight_bytes + n_pad * 4),
    )

    kernel = functools.partial(link_predictor_kernel, bf16_vpu=bf16_vpu)

    out = pl.pallas_call(
        kernel,
        out_shape=jax.ShapeDtypeStruct((1, n_pad), jnp.float32),
        grid_spec=pltpu.PrefetchScalarGridSpec(
            num_scalar_prefetch=0,
            grid=grid,
            in_specs=[
                in_row_spec,            # x_i tile  (TM, d_in)  bf16
                in_row_spec,            # x_j tile  (TM, d_in)  bf16
                full_spec(w1b.shape),   # W1 [hid, in]   bf16
                full_spec(b1c.shape),   # b1 [hid, 1]    f32
                full_spec(w2b.shape),   # W2 [hid, hid]  bf16
                full_spec(b2c.shape),   # b2 [hid, 1]    f32
                full_spec(w3c.shape),   # w3 [1, hid]    bf16/f32
                full_spec(b3c.shape),   # b3 [1, 1]      f32
            ],
            out_specs=pl.BlockSpec((1, tm), lambda i: (0, i)),   # lane-dense output
        ),
        compiler_params=pltpu.CompilerParams(
            dimension_semantics=("parallel",)),
        cost_estimate=cost,
    )(xi_p, xj_p, w1b, b1c, w2b, b2c, w3c, b3c)

    # Back to the PyTorch output layout (n, 1); drop the padded rows (padded lanes
    # hold bias-only sigmoid garbage by design).
    return out[0, :n].reshape(n, d_out)


def init_params(key):
    """Deterministic init mimicking torch.nn.Linear (W: [out, in], b: [out])."""
    dims = [IN_CHANNELS] + [HIDDEN_CHANNELS] * (NUM_LAYERS - 1) + [OUT_CHANNELS]
    params = []
    for li in range(NUM_LAYERS):
        fan_in, fan_out = dims[li], dims[li + 1]
        key, kw, kb = jax.random.split(key, 3)
        bound = 1.0 / (fan_in ** 0.5)
        w = jax.random.uniform(kw, (fan_out, fan_in), jnp.float32, -bound, bound)
        b = jax.random.uniform(kb, (fan_out,), jnp.float32, -bound, bound)
        params.append((w, b))
    return params


def reference_f32(x_i, x_j, params):
    """Pure f32 reference with PyTorch semantics."""
    x = x_i * x_j
    for (w, b) in params[:-1]:
        x = jnp.maximum(x @ w.T + b, 0.0)
    w, b = params[-1]
    return jax.nn.sigmoid(x @ w.T + b)


def reference_kernel_dtypes(x_i, x_j, params, bf16_vpu):
    """Reference mirroring the kernel's exact cast placement."""
    (w1, b1), (w2, b2), (w3, b3) = params
    bf16, f32 = jnp.bfloat16, jnp.float32
    x = x_i.astype(bf16).astype(f32) * x_j.astype(bf16).astype(f32)
    xb = x.astype(bf16)
    h = jnp.dot(xb, w1.astype(bf16).T, preferred_element_type=f32) + b1
    h = jnp.maximum(h, 0.0).astype(bf16)          # relu/cast order is numerically identical
    h = jnp.dot(h, w2.astype(bf16).T, preferred_element_type=f32) + b2
    if bf16_vpu:
        h = jnp.maximum(h, 0.0).astype(bf16)
        z = jnp.dot(h, w3.astype(bf16).T, preferred_element_type=f32) + b3
    else:
        h = jnp.maximum(h, 0.0)
        z = jnp.dot(h, w3.astype(f32).T, preferred_element_type=f32) + b3
    return jax.nn.sigmoid(z)


if __name__ == "__main__":
    key = jax.random.PRNGKey(0)
    kp, ki, kj = jax.random.split(key, 3)
    params = init_params(kp)
    x_i = jax.random.normal(ki, (BATCH, IN_CHANNELS), jnp.float32)
    x_j = jax.random.normal(kj, (BATCH, IN_CHANNELS), jnp.float32)

    ref_f = reference_f32(x_i, x_j, params)

    # Auto-detected activation-dtype path; BATCH=200 -> grid=(2,) (megacore split).
    out_auto = jax.block_until_ready(link_predictor(x_i, x_j, params))
    assert out_auto.shape == (BATCH, OUT_CHANNELS)
    assert jnp.allclose(out_auto, ref_f, atol=5e-2, rtol=5e-2)

    # Exercise both explicit generation paths (v6e/v7x bf16-VPU and v5e f32-VPU).
    for flag in (True, False):
        out = jax.block_until_ready(link_predictor(x_i, x_j, params, bf16_vpu=flag))
        ref_m = reference_kernel_dtypes(x_i, x_j, params, flag)
        assert out.shape == (BATCH, OUT_CHANNELS)
        assert jnp.allclose(out, ref_m, atol=2e-3, rtol=2e-3)
        assert jnp.allclose(out, ref_f, atol=5e-2, rtol=5e-2)

    # Single-tile path (padded batch < 256 rows -> grid=(1,)).
    x_i_s, x_j_s = x_i[:100], x_j[:100]
    out_s = jax.block_until_ready(link_predictor(x_i_s, x_j_s, params))
    assert out_s.shape == (100, OUT_CHANNELS)
    assert jnp.allclose(out_s, reference_f32(x_i_s, x_j_s, params), atol=5e-2, rtol=5e-2)

    print("KERNEL_OK")
</pallas_src>

<mosaic_0001>
module attributes {stable_mosaic.version = 11 : i64} {
  func.func @link_predictor_kernel(%arg0: i32, %arg1: memref<128x32xbf16, #tpu.memory_space<vmem>>, %arg2: memref<128x32xbf16, #tpu.memory_space<vmem>>, %arg3: memref<64x32xbf16, #tpu.memory_space<vmem>>, %arg4: memref<64x1xf32, #tpu.memory_space<vmem>>, %arg5: memref<64x64xbf16, #tpu.memory_space<vmem>>, %arg6: memref<64x1xf32, #tpu.memory_space<vmem>>, %arg7: memref<1x64xbf16, #tpu.memory_space<vmem>>, %arg8: memref<1x1xf32, #tpu.memory_space<vmem>>, %arg9: memref<1x128xf32, #tpu.memory_space<vmem>>) attributes {dimension_semantics = [#tpu.dimension_semantics<parallel>], iteration_bounds = array<i64: 2>, scalar_prefetch = 0 : i64, scratch_operands = 0 : i64, tpu.core_type = #tpu.core_type<tc>, window_params = [{transform_indices = @transform_0, window_bounds = array<i64: 128, 32>}, {transform_indices = @transform_1, window_bounds = array<i64: 128, 32>}, {pipeline_mode = #tpu.pipeline_mode<synchronous>, transform_indices = @transform_2, window_bounds = array<i64: 64, 32>}, {pipeline_mode = #tpu.pipeline_mode<synchronous>, transform_indices = @transform_3, window_bounds = array<i64: 64, 1>}, {pipeline_mode = #tpu.pipeline_mode<synchronous>, transform_indices = @transform_4, window_bounds = array<i64: 64, 64>}, {pipeline_mode = #tpu.pipeline_mode<synchronous>, transform_indices = @transform_5, window_bounds = array<i64: 64, 1>}, {pipeline_mode = #tpu.pipeline_mode<synchronous>, transform_indices = @transform_6, window_bounds = array<i64: 1, 64>}, {pipeline_mode = #tpu.pipeline_mode<synchronous>, transform_indices = @transform_7, window_bounds = array<i64: 1, 1>}, {transform_indices = @transform_8, window_bounds = array<i64: 1, 128>}]} {
    %c0 = arith.constant 0 : index
    %c0_0 = arith.constant 0 : index
    %0 = vector.load %arg1[%c0, %c0_0] : memref<128x32xbf16, #tpu.memory_space<vmem>>, vector<128x32xbf16>
    %1 = arith.extf %0 : vector<128x32xbf16> to vector<128x32xf32>
    %c0_1 = arith.constant 0 : index
    %c0_2 = arith.constant 0 : index
    %2 = vector.load %arg2[%c0_1, %c0_2] : memref<128x32xbf16, #tpu.memory_space<vmem>>, vector<128x32xbf16>
    %3 = arith.extf %2 : vector<128x32xbf16> to vector<128x32xf32>
    %4 = arith.mulf %1, %3 : vector<128x32xf32>
    %5 = tpu.transpose %4, [1, 0] : vector<128x32xf32> -> vector<32x128xf32>
    %6 = arith.truncf %5 : vector<32x128xf32> to vector<32x128xbf16>
    %c0_3 = arith.constant 0 : index
    %c0_4 = arith.constant 0 : index
    %7 = vector.load %arg3[%c0_3, %c0_4] : memref<64x32xbf16, #tpu.memory_space<vmem>>, vector<64x32xbf16>
    %cst = arith.constant dense<0.000000e+00> : vector<64x128xf32>
    %8 = tpu.matmul %7, %6, %cst {dimension_numbers = #tpu.dot_dimension_numbers<[1], [0], [0], [1], [0, 0, 1, 1], [], []>} : vector<64x32xbf16>, vector<32x128xbf16>, vector<64x128xf32> -> vector<64x128xf32>
    %c0_5 = arith.constant 0 : index
    %c0_6 = arith.constant 0 : index
    %9 = vector.load %arg4[%c0_5, %c0_6] : memref<64x1xf32, #tpu.memory_space<vmem>>, vector<64x1xf32>
    %10 = vector.broadcast %9 : vector<64x1xf32> to vector<64x128xf32>
    %11 = arith.addf %8, %10 : vector<64x128xf32>
    %12 = arith.truncf %11 : vector<64x128xf32> to vector<64x128xbf16>
    %cst_7 = arith.constant 0.000000e+00 : bf16
    %13 = vector.broadcast %cst_7 : bf16 to vector<64x128xbf16>
    %14 = arith.maximumf %12, %13 : vector<64x128xbf16>
    %c0_8 = arith.constant 0 : index
    %c0_9 = arith.constant 0 : index
    %15 = vector.load %arg5[%c0_8, %c0_9] : memref<64x64xbf16, #tpu.memory_space<vmem>>, vector<64x64xbf16>
    %cst_10 = arith.constant dense<0.000000e+00> : vector<64x128xf32>
    %16 = tpu.matmul %15, %14, %cst_10 {dimension_numbers = #tpu.dot_dimension_numbers<[1], [0], [0], [1], [0, 0, 1, 1], [], []>} : vector<64x64xbf16>, vector<64x128xbf16>, vector<64x128xf32> -> vector<64x128xf32>
    %c0_11 = arith.constant 0 : index
    %c0_12 = arith.constant 0 : index
    %17 = vector.load %arg6[%c0_11, %c0_12] : memref<64x1xf32, #tpu.memory_space<vmem>>, vector<64x1xf32>
    %18 = vector.broadcast %17 : vector<64x1xf32> to vector<64x128xf32>
    %19 = arith.addf %16, %18 : vector<64x128xf32>
    %20 = arith.truncf %19 : vector<64x128xf32> to vector<64x128xbf16>
    %cst_13 = arith.constant 0.000000e+00 : bf16
    %21 = vector.broadcast %cst_13 : bf16 to vector<64x128xbf16>
    %22 = arith.maximumf %20, %21 : vector<64x128xbf16>
    %c0_14 = arith.constant 0 : index
    %c0_15 = arith.constant 0 : index
    %23 = vector.load %arg7[%c0_14, %c0_15] : memref<1x64xbf16, #tpu.memory_space<vmem>>, vector<1x64xbf16>
    %cst_16 = arith.constant dense<0.000000e+00> : vector<1x128xf32>
    %24 = tpu.matmul %23, %22, %cst_16 {dimension_numbers = #tpu.dot_dimension_numbers<[1], [0], [0], [1], [0, 0, 1, 1], [], []>} : vector<1x64xbf16>, vector<64x128xbf16>, vector<1x128xf32> -> vector<1x128xf32>
    %c0_17 = arith.constant 0 : index
    %c0_18 = arith.constant 0 : index
    %25 = vector.load %arg8[%c0_17, %c0_18] : memref<1x1xf32, #tpu.memory_space<vmem>>, vector<1x1xf32>
    %26 = vector.broadcast %25 : vector<1x1xf32> to vector<1x128xf32>
    %27 = arith.addf %24, %26 : vector<1x128xf32>
    %28 = arith.negf %27 : vector<1x128xf32>
    %29 = math.exp %28 : vector<1x128xf32>
    %cst_19 = arith.constant 1.000000e+00 : f32
    %30 = vector.broadcast %cst_19 : f32 to vector<1x128xf32>
    %31 = arith.addf %30, %29 : vector<1x128xf32>
    %32 = arith.divf %30, %31 : vector<1x128xf32>
    %c0_20 = arith.constant 0 : index
    %c0_21 = arith.constant 0 : index
    %33 = vector.load %arg9[%c0_20, %c0_21] : memref<1x128xf32, #tpu.memory_space<vmem>>, vector<1x128xf32>
    tpu.vector_store %arg9[%c0_20, %c0_21], %32 {strides = array<i32>} : memref<1x128xf32, #tpu.memory_space<vmem>>, vector<1x128xf32>,
    return
  }
  func.func @transform_0(%arg0: i32) -> (i32, i32) {
    %c0_i32 = arith.constant 0 : i32
    %c0_i32_0 = arith.constant 0 : i32
    return %arg0, %c0_i32 : i32, i32
  }
  func.func @transform_1(%arg0: i32) -> (i32, i32) {
    %c0_i32 = arith.constant 0 : i32
    %c0_i32_0 = arith.constant 0 : i32
    return %arg0, %c0_i32 : i32, i32
  }
  func.func @transform_2(%arg0: i32) -> (i32, i32) {
    %c0_i32 = arith.constant 0 : i32
    %c0_i32_0 = arith.constant 0 : i32
    %c0_i32_1 = arith.constant 0 : i32
    return %c0_i32, %c0_i32_0 : i32, i32
  }
  func.func @transform_3(%arg0: i32) -> (i32, i32) {
    %c0_i32 = arith.constant 0 : i32
    %c0_i32_0 = arith.constant 0 : i32
    %c0_i32_1 = arith.constant 0 : i32
    return %c0_i32, %c0_i32_0 : i32, i32
  }
  func.func @transform_4(%arg0: i32) -> (i32, i32) {
    %c0_i32 = arith.constant 0 : i32
    %c0_i32_0 = arith.constant 0 : i32
    %c0_i32_1 = arith.constant 0 : i32
    return %c0_i32, %c0_i32_0 : i32, i32
  }
  func.func @transform_5(%arg0: i32) -> (i32, i32) {
    %c0_i32 = arith.constant 0 : i32
    %c0_i32_0 = arith.constant 0 : i32
    %c0_i32_1 = arith.constant 0 : i32
    return %c0_i32, %c0_i32_0 : i32, i32
  }
  func.func @transform_6(%arg0: i32) -> (i32, i32) {
    %c0_i32 = arith.constant 0 : i32
    %c0_i32_0 = arith.constant 0 : i32
    %c0_i32_1 = arith.constant 0 : i32
    return %c0_i32, %c0_i32_0 : i32, i32
  }
  func.func @transform_7(%arg0: i32) -> (i32, i32) {
    %c0_i32 = arith.constant 0 : i32
    %c0_i32_0 = arith.constant 0 : i32
    %c0_i32_1 = arith.constant 0 : i32
    return %c0_i32, %c0_i32_0 : i32, i32
  }
  func.func @transform_8(%arg0: i32) -> (i32, i32) {
    %c0_i32 = arith.constant 0 : i32
    %c0_i32_0 = arith.constant 0 : i32
    return %c0_i32, %arg0 : i32, i32
  }
}

</mosaic_0001>

<bundles_post_ra>
// kernel: tpu_custom_call.1
= control target key start
LH: loop header
LB: loop body
LE: loop exit
PB: predicated region body
PF: predicated region fallthrough
CT: control target
= control target key end

     0   :  { %s1359_s0 = inlined_call_operand.vmem [shape: bf16[256,32], index: 0, kind: input, shape index: {}]   ;;  %s1360_s1 = inlined_call_operand.vmem [shape: bf16[256,32], index: 1, kind: input, shape index: {}]   ;;  %s1361_s2 = inlined_call_operand.vmem [shape: bf16[64,32], index: 2, kind: input, shape index: {}]   ;;  %s1362_s3 = inlined_call_operand.vmem [shape: f32[64,1], index: 3, kind: input, shape index: {}]   ;;  %s1363_s4 = inlined_call_operand.vmem [shape: bf16[64,64], index: 4, kind: input, shape index: {}]   ;;  %s1364_s5 = inlined_call_operand.vmem [shape: f32[64,1], index: 5, kind: input, shape index: {}]   ;;  %s1365_s6 = inlined_call_operand.vmem [shape: bf16[1,64], index: 6, kind: input, shape index: {}]   ;;  %s1366_s7 = inlined_call_operand.<no memory space> [shape: f32[1,1], index: 7, kind: input, shape index: {}]   ;;  %s1367_s8 = inlined_call_operand.hbm [shape: f32[1,256], index: 8, kind: output, shape index: {}]  }
   0x1   :  { %v13_v0 = vstv %s1366_s7 }
   0x2   :  { %14 = vst [vmem:[#allocation2] sm:$0x1] %v13_v0 }
   0x3   :  { %15 = vsyncpa [#allocation4], 0 }
   0x4   :  { %17 = vsyncpa [#allocation4 + $0x1], 0  ;;  %s1168_s29 = smov 0   ;;  %s1170_s30 = smov 0  }
   0x5   :  { %s1172_s9 = smov 0   ;;  %s1174_s10 = smov 0  }
   0x6 LB: > { %s1189_s7 = sadd.s32 4294967295, %s1117_s10   ;;  %s860_s11 = sadd.s32 4294967294, %s1117_s10   ;;  %s1117_s10 = sphi %s1174_s10, %s1373_s10   ;;  %s1113_s9 = sphi %s1172_s9, %s1372_s9   ;;  %s1109_s30 = sphi %s1170_s30, %s1371_s30   ;;  %s1105_s29 = sphi %s1168_s29, %s1370_s29  }
   0x7   : > { %s1193_s12 = sadd.s32 1, %s1117_s10   ;;  %s208_s13 = sadd.s32 1, %s1113_s9 }
   0x8   : > { %s205_s14 = ssub.s32 %s1117_s10, %s1193_s12  ;;  %p218_p0 = scmp.ne.s32.totalorder %s1113_s9, %s1109_s30 }
   0x9   : > { %p206_p1 = scmp.eq.s32.totalorder %s205_s14, 0  ;;  %p219_p2 = scmp.eq.s32.totalorder %s1189_s7, 1 }
   0xa   : > { %p224_p3 = scmp.ne.s32.totalorder %s1109_s30, %s1105_s29  ;;  %p225_p4 = scmp.eq.s32.totalorder %s860_s11, 1 }
   0xb   : > { %s1204_s15 = scalar_select %p206_p1, %s1113_s9, %s208_s13  }
   0xc   : > { %p1206_p5 = por %p219_p2, %p218_p0  ;;  %p1210_p6 = por %p225_p4, %p224_p3 }
   0xd   : > { %p863_p7 = scmp.ge.s32.totalorder %s1117_s10, 1  ;;  %p279_p8 = scmp.lt.s32.totalorder %s1117_s10, 3 }
   0xf   : > { %p280_p9 = pnand %p863_p7, %p279_p8 }
  0x10   : > { %s864_s18 = sshll.u32 (!%p280_p9), %s1189_s7, 4  ;;  %s315_s20 = sand.u32 (!%p280_p9), 1, %s1109_s30  }
  0x11   : > { %283 = sbr.rel (%p280_p9) target bundleno = 755 (0x2f3), region = 52  ;;  %p318_p10 = scmp.lt.s32.totalorder (!%p280_p9), %s864_s18, 31 }
  0x12   : > { %s789_s23 = scalar_lea.hbm (!%p280_p9), %s1367_s8, %s1189_s7  ;;  %s316_s24 = scalar_lea.vmem (!%p280_p9), [#allocation3], %s315_s20 }
  0x13   : > { %s793_s26 = sshll.u32 (!%p280_p9), %s789_s23, 4  ;;  %s781_s27 = scalar_lea.sflag (!%p280_p9), [#allocation4], %s315_s20  ;;  %s794_s26 = int_to_ptr.hbm [resolvable:$true] %s793_s26 }
  0x14   : > { %s1069_s7 = sshra.s32 (!%p280_p9), %s794_s26, 4  ;;  %s1075_s14 = scalar_lea.hbm (!%p280_p9), %s1367_s8, 2  ;;  %s1070_s7 = int_to_ptr.hbm [resolvable:$true] %s1069_s7 }
  0x15   : > { %s1071_s28 = scalar_lea.hbm (!%p280_p9), %s1070_s7, 1  ;;  %p1076_p0 = scmp.lt.s32.totalorder (!%p280_p9), %s1070_s7, %s1367_s8 }
  0x16   : > { %s1375_s18 = smov (!%p318_p10, %s864_s18), 31  ;;  %vm520_vm0 = vcmask 261120   ;;  %vm666_vm1 = vcmask 523264   ;;  %p1072_p11 = scmp.ne.s32.totalorder %s1070_s7, %s1071_s28 }
  0x17   : > { %s865_s19 = sshll.u32 %s1375_s18, 2  ;;  %p1077_p1 = scmp.lt.s32.totalorder %s1075_s14, %s1071_s28 }
  0x18   : > { %s1220_s22 = scalar_lea.vmem %s1359_s0, %s865_s19  ;;  %s1225_s25 = scalar_lea.vmem %s1360_s1, %s865_s19 }
  0x19   : > { %v921_v1 = vld [vmem:[%s1220_s22] sm:$0xff]   ;;  %v984_v9 = vld [vmem:[%s1220_s22 + $0x8] sm:$0xff]   ;;  %v985_v17 = vld [vmem:[%s1220_s22 + $0x10] sm:$0xff]   ;;  %p1073_p12 = pnand %p1072_p11, %p1206_p5  ;;  %p1078_p2 = por %p1077_p1, %p1076_p0 }
  0x1a   : > { %v953_v2 = vld [vmem:[%s1225_s25] sm:$0xff]   ;;  %v922_v3 = vunpack.c.l.bf16 %v921_v1  ;;  %v923_v6 = vunpack.c.h.bf16 %v921_v1  ;;  %v991_v10 = vld [vmem:[%s1225_s25 + $0x8] sm:$0xff]   ;;  %v926_v11 = vunpack.c.l.bf16 %v984_v9  ;;  %v927_v14 = vunpack.c.h.bf16 %v984_v9  ;;  %v992_v18 = vld [vmem:[%s1225_s25 + $0x10] sm:$0xff]  }
  0x1b   : > { %v954_v4 = vunpack.c.l.bf16 %v953_v2  ;;  %v955_v7 = vunpack.c.h.bf16 %v953_v2  ;;  %v958_v12 = vunpack.c.l.bf16 %v991_v10  ;;  %v959_v15 = vunpack.c.h.bf16 %v991_v10  ;;  %v986_v25 = vld [vmem:[%s1220_s22 + $0x18] sm:$0xff]   ;;  %v987_v33 = vld [vmem:[%s1220_s22 + $0x20] sm:$0xff]   ;;  %v988_v41 = vld [vmem:[%s1220_s22 + $0x28] sm:$0xff]   ;;  %p1074_p13 = pneg %p1073_p12 }
  0x1c   : > { %v930_v19 = vunpack.c.l.bf16 %v985_v17  ;;  %v962_v20 = vunpack.c.l.bf16 %v992_v18  ;;  %v931_v22 = vunpack.c.h.bf16 %v985_v17  ;;  %v963_v23 = vunpack.c.h.bf16 %v992_v18  ;;  %v993_v26 = vld [vmem:[%s1225_s25 + $0x18] sm:$0xff]   ;;  %v994_v34 = vld [vmem:[%s1225_s25 + $0x20] sm:$0xff]   ;;  %v995_v42 = vld [vmem:[%s1225_s25 + $0x28] sm:$0xff]  }
  0x1d   : > { %v394_v5 = vmul.f32 %v954_v4, %v922_v3  ;;  %v395_v8 = vmul.f32 %v955_v7, %v923_v6  ;;  %v396_v13 = vmul.f32 %v958_v12, %v926_v11  ;;  %v397_v16 = vmul.f32 %v959_v15, %v927_v14  ;;  %v989_v49 = vld [vmem:[%s1220_s22 + $0x30] sm:$0xff]   ;;  %v990_v57 = vld [vmem:[%s1220_s22 + $0x38] sm:$0xff]   ;;  %v456_v7 = vld [vmem:[%s1362_s3 + $0x20] sm:$0xff]  ;;  %p1079_p3 = pnand %p1078_p2, %p1074_p13 }
  0x1e   : > { %v398_v21 = vmul.f32 %v962_v20, %v930_v19  ;;  %v399_v24 = vmul.f32 %v963_v23, %v931_v22  ;;  %v934_v27 = vunpack.c.l.bf16 %v986_v25  ;;  %v966_v28 = vunpack.c.l.bf16 %v993_v26  ;;  %v996_v50 = vld [vmem:[%s1225_s25 + $0x30] sm:$0xff]   ;;  %v997_v58 = vld [vmem:[%s1225_s25 + $0x38] sm:$0xff]   ;;  %v457_v10 = vld [vmem:[%s1362_s3 + $0x28] sm:$0xff]  ;;  %s791_s25 = sshll.u32 %s316_s24, 4  ;;  %s792_s25 = int_to_ptr.vmem [resolvable:$true] %s791_s25 }
  0x1f   : > { %410 = vxpose.xlu0.b32.start [1/16] (narrow) %v394_v5, 32  ;;  %v935_v30 = vunpack.c.h.bf16 %v986_v25  ;;  %v967_v31 = vunpack.c.h.bf16 %v993_v26  ;;  %v938_v35 = vunpack.c.l.bf16 %v987_v33  ;;  %v970_v36 = vunpack.c.l.bf16 %v994_v34  ;;  %v458_v1 = vld [vmem:[%s1362_s3 + $0x30] sm:$0xff]  ;;  %v459_v3 = vld [vmem:[%s1362_s3 + $0x38] sm:$0xff]  ;;  %v452_v5 = vld [vmem:[%s1362_s3] sm:$0xff] }
  0x20   : > { %v400_v29 = vmul.f32 %v966_v28, %v934_v27  ;;  %v939_v38 = vunpack.c.h.bf16 %v987_v33  ;;  %v971_v39 = vunpack.c.h.bf16 %v994_v34  ;;  %v942_v43 = vunpack.c.l.bf16 %v988_v41  ;;  %v454_v4 = vld [vmem:[%s1362_s3 + $0x10] sm:$0xff]  ;;  %v602_v11 = vld [vmem:[%s1364_s5 + $0x20] sm:$0xff]  ;;  %v453_v17 = vld [vmem:[%s1362_s3 + $0x8] sm:$0xff] }
  0x21   : > { %v401_v32 = vmul.f32 %v967_v31, %v935_v30  ;;  %v402_v37 = vmul.f32 %v970_v36, %v938_v35  ;;  %v974_v44 = vunpack.c.l.bf16 %v995_v42  ;;  %v943_v46 = vunpack.c.h.bf16 %v988_v41  ;;  %v600_v14 = vld [vmem:[%s1364_s5 + $0x10] sm:$0xff]  ;;  %v598_v18 = vld [vmem:[%s1364_s5] sm:$0xff]  ;;  %v605_v22 = vld [vmem:[%s1364_s5 + $0x38] sm:$0xff] }
  0x22   : > { %v403_v40 = vmul.f32 %v971_v39, %v939_v38  ;;  %v975_v47 = vunpack.c.h.bf16 %v995_v42  ;;  %v946_v51 = vunpack.c.l.bf16 %v989_v49  ;;  %v978_v52 = vunpack.c.l.bf16 %v996_v50  ;;  %v912_v20 = vld [vmem:[%s1361_s2] sm:$0xff]  ;;  %v913_v25 = vld [vmem:[%s1361_s2 + $0x8] sm:$0xff]  ;;  %v601_v26 = vld [vmem:[%s1364_s5 + $0x18] sm:$0xff] }
  0x23   : > { %v404_v45 = vmul.f32 %v974_v44, %v942_v43  ;;  %v947_v54 = vunpack.c.h.bf16 %v989_v49  ;;  %v979_v55 = vunpack.c.h.bf16 %v996_v50  ;;  %v950_v59 = vunpack.c.l.bf16 %v990_v57  ;;  %v737_v23 = vld [vmem:[#allocation2] sm:$0x1]  ;;  %v599_v27 = vld [vmem:[%s1364_s5 + $0x8] sm:$0xff]  ;;  %v914_v28 = vld [vmem:[%s1361_s2 + $0x10] sm:$0xff] }
  0x24   : > { %v405_v48 = vmul.f32 %v975_v47, %v943_v46  ;;  %v406_v53 = vmul.f32 %v978_v52, %v946_v51  ;;  %v982_v60 = vunpack.c.l.bf16 %v997_v58  ;;  %v951_v62 = vunpack.c.h.bf16 %v990_v57 }
  0x25   : > { %v407_v56 = vmul.f32 %v979_v55, %v947_v54  ;;  %v983_v63 = vunpack.c.h.bf16 %v997_v58  ;;  %v1119_v2 = vmov 0  }
  0x26   : > { %v408_v61 = vmul.f32 %v982_v60, %v950_v59  ;;  %1048 = vset.pattern.permute.xlu1 %v1119_v2  ;;  %1049 = vset.pattern.permute.xlu2 %v1119_v2 }
  0x27   : > { %411 = vxpose.xlu0.b32.cont [2/16] (narrow) %v395_v8, 32  ;;  %v409_v0 = vmul.f32 %v983_v63, %v951_v62  ;;  %492 = vperm.xlu1 %1048, %v458_v1   ;;  %v604_v8 = vld [vmem:[%s1364_s5 + $0x30] sm:$0xff]  ;;  %v916_v1 = vld [vmem:[%s1363_s4] sm:$0xff] }
  0x28   : > { %482 = vperm.xlu2 %1049, %v456_v7  }
  0x2f   : > { %412 = vxpose.xlu0.b32.cont [3/16] (narrow) %v396_v13, 32  ;;  %497 = vperm.xlu1 %1048, %v459_v3   ;;  %v455_v13 = vld [vmem:[%s1362_s3 + $0x18] sm:$0xff]  ;;  %v918_v3 = vld [vmem:[%s1363_s4 + $0x10] sm:$0xff] }
  0x30   : > { %487 = vperm.xlu2 %1049, %v457_v10  }
  0x37   : > { %413 = vxpose.xlu0.b32.cont [4/16] (narrow) %v397_v16, 32  ;;  %472 = vperm.xlu1 %1048, %v454_v4   ;;  %v919_v4 = vld [vmem:[%s1363_s4 + $0x18] sm:$0xff] }
  0x38   : > { %477 = vperm.xlu2 %1049, %v455_v13  }
  0x3f   : > { %414 = vxpose.xlu0.b32.cont [5/16] (narrow) %v398_v21, 32  ;;  %462 = vperm.xlu1 %1048, %v452_v5   ;;  %v915_v21 = vld [vmem:[%s1361_s2 + $0x18] sm:$0xff] }
  0x40   : > { %467 = vperm.xlu2 %1049, %v453_v17  }
  0x47   : > { %415 = vxpose.xlu0.b32.cont [6/16] (narrow) %v399_v24, 32  ;;  %638 = vperm.xlu1 %1048, %v604_v8   ;;  %v603_v24 = vld [vmem:[%s1364_s5 + $0x28] sm:$0xff] }
  0x48   : > { %643 = vperm.xlu2 %1049, %v605_v22  }
  0x4f   : > { %416 = vxpose.xlu0.b32.cont [7/16] (narrow) %v400_v29, 32  ;;  %628 = vperm.xlu1 %1048, %v602_v11  }
  0x50   : > { %633 = vperm.xlu2 %1049, %v603_v24  }
  0x57   : > { %417 = vxpose.xlu0.b32.cont [8/16] (narrow) %v401_v32, 32  ;;  %618 = vperm.xlu1 %1048, %v600_v14  }
  0x58   : > { %623 = vperm.xlu2 %1049, %v601_v26  }
  0x5f   : > { %418 = vxpose.xlu0.b32.cont [9/16] (narrow) %v402_v37, 32  ;;  %608 = vperm.xlu1 %1048, %v598_v18  }
  0x60   : > { %613 = vperm.xlu2 %1049, %v599_v27  }
  0x67   : > { %419 = vxpose.xlu0.b32.cont [10/16] (narrow) %v403_v40, 32  ;;  %740 = vperm.xlu1 %1048, %v737_v23  }
  0x6f   : > { %420 = vxpose.xlu0.b32.cont [11/16] (narrow) %v404_v45, 32 }
  0x77   : > { %421 = vxpose.xlu0.b32.cont [12/16] (narrow) %v405_v48, 32 }
  0x7f   : > { %422 = vxpose.xlu0.b32.cont [13/16] (narrow) %v406_v53, 32 }
  0x82   : > { %v483_v40 = vpop.permute.xlu2 %482 }
  0x87   : > { %423 = vxpose.xlu0.b32.cont [14/16] (narrow) %v407_v56, 32 }
  0x8a   : > { %v488_v42 = vpop.permute.xlu2 %487 }
  0x8f   : > { %424 = vxpose.xlu0.b32.cont [15/16] (narrow) %v408_v61, 32 }
  0x92   : > { %v478_v45 = vpop.permute.xlu2 %477 }
  0x97   : > { %425 = vxpose.xlu0.b32.end [16/16] (narrow) %v409_v0, 32 }
  0x99   : > { %v493_v29 = vpop.permute.xlu1 %492 }
  0x9a   : > { %v468_v54 = vpop.permute.xlu2 %467 }
  0xa1   : > { %v498_v33 = vpop.permute.xlu1 %497 }
  0xa9   : > { %v473_v46 = vpop.permute.xlu1 %472 }
  0xb1   : > { %v463_v58 = vpop.permute.xlu1 %462 }
  0xb9   : > { %v639_v7 = vpop.permute.xlu1 %638 }
  0xc1   : > { %v629_v10 = vpop.permute.xlu1 %628 }
  0xc3   : > { %v426_v6 = vpop.trf.xlu0 }
  0xcb   : > { %v427_v9 = vpop.trf.xlu0 }
  0xcc   : > { %v442_v19 = vpack.c.bf16 %v427_v9, %v426_v6  ;;  %v644_v6 = vpop.permute.xlu2 %643 }
  0xd3   : > { %v428_v12 = vpop.trf.xlu0 }
  0xd4   : > { %v634_v9 = vpop.permute.xlu2 %633 }
  0xdb   : > { %v429_v15 = vpop.trf.xlu0 }
  0xdc   : > { %v443_v16 = vpack.c.bf16 %v429_v15, %v428_v12  ;;  %v624_v14 = vpop.permute.xlu2 %623 }
  0xde   : > { %539 = vmatpush.bf16.msra.mxu0 %v443_v16  ;;  %998 = vmatpush.bf16.msra.mxu1 %v443_v16  ;;  %v619_v16 = vpop.permute.xlu1 %618 }
  0xe2   : > { %540 = vmatpush.bf16.msra.mxu0 %v442_v19  ;;  %999 = vmatpush.bf16.msra.mxu1 %v442_v19 }
  0xe5   : > { %884 = vmatmul.msk.bf16.vlgmr.msra.gmra.mxu0 %vm520_vm0, %v912_v20  ;;  %887 = vmatmul.msk.bf16.vlgmr.msra.gmra.mxu1 %vm520_vm0, %v915_v21 }
  0xf5   : > { %885 = vmatmul.msk.bf16.gmra.mxu0 %vm520_vm0, %v913_v25 }
  0xfe   : > { %1050 = vset.pattern.permute.xlu0 %v1119_v2  ;;  %v917_v2 = vld [vmem:[%s1363_s4 + $0x8] sm:$0xff] }
 0x105   : > { %886 = vmatmul.msk.bf16.gmra.mxu0 %vm520_vm0, %v914_v28 }
 0x162   : > { %v542_v30 = vpop.f32.mrf.mxu0  ;;  %v557_v31 = vpop.f32.mrf.mxu1 }
 0x163   : > { %v558_v32 = vadd.f32 %v557_v31, %v493_v29  ;;  %v543_v59 = vadd.f32 %v542_v30, %v463_v58  ;;  %v614_v30 = vpop.permute.xlu2 %613 }
 0x165   : > { %v584_v36 = vmax.f32 %v558_v32, 0.0  ;;  %v578_v63 = vmax.f32 %v543_v59, 0.0 }
 0x16a   : > { %v544_v34 = vpop.f32.mrf.mxu0  ;;  %v559_v35 = vpop.f32.mrf.mxu1 }
 0x16b   : > { %v560_v37 = vadd.f32 %v559_v35, %v498_v33  ;;  %v545_v55 = vadd.f32 %v544_v34, %v468_v54  ;;  %v609_v34 = vpop.permute.xlu1 %608 }
 0x16d   : > { %v585_v38 = vmax.f32 %v560_v37, 0.0  ;;  %v579_v61 = vmax.f32 %v545_v55, 0.0 }
 0x16f   : > { %v589_v39 = vpack.c.bf16 %v585_v38, %v584_v36  ;;  %v586_v0 = vpack.c.bf16 %v579_v61, %v578_v63 }
 0x171   : > { %683 = vmatpush.bf16.msrb.mxu1 %v589_v39  ;;  %1000 = vmatpush.bf16.msra.mxu2 %v589_v39 }
 0x172   : > { %v547_v41 = vpop.f32.mrf.mxu0  ;;  %1001 = vmatpush.bf16.msra.mxu3 %v589_v39 }
 0x173   : > { %v548_v51 = vadd.f32 %v547_v41, %v473_v46  ;;  %v736_v41 = vld [vmem:[%s1365_s6] sm:$0x1] }
 0x175   : > { %v580_v60 = vmax.f32 %v548_v51, 0.0 }
 0x17a   : > { %v549_v43 = vpop.f32.mrf.mxu0 }
 0x17b   : > { %v550_v49 = vadd.f32 %v549_v43, %v478_v45 }
 0x17d   : > { %v581_v56 = vmax.f32 %v550_v49, 0.0 }
 0x17f   : > { %v587_v62 = vpack.c.bf16 %v581_v56, %v580_v60 }
 0x182   : > { %v552_v44 = vpop.f32.mrf.mxu0 }
 0x183   : > { %v553_v47 = vadd.f32 %v552_v44, %v483_v40 }
 0x185   : > { %v582_v52 = vmax.f32 %v553_v47, 0.0 }
 0x18a   : > { %v554_v48 = vpop.f32.mrf.mxu0 }
 0x18b   : > { %v555_v50 = vadd.f32 %v554_v48, %v488_v42  ;;  %v741_v42 = vpop.permute.xlu1 %740 }
 0x18c   : > { %v743_v43 = vperm.slane %v741_v42, 0 }
 0x18d   : > { %v583_v53 = vmax.f32 %v555_v50, 0.0 }
 0x18f   : > { %v588_v57 = vpack.c.bf16 %v583_v53, %v582_v52 }
 0x191   : > { %684 = vmatpush.bf16.msrb.mxu1 %v588_v57  ;;  %1002 = vmatpush.bf16.msra.mxu2 %v588_v57 }
 0x192   : > { %1003 = vmatpush.bf16.msra.mxu3 %v588_v57 }
 0x195   : > { %685 = vmatpush.bf16.msrb.mxu1 %v587_v62  ;;  %1004 = vmatpush.bf16.msra.mxu2 %v587_v62 }
 0x196   : > { %1005 = vmatpush.bf16.msra.mxu3 %v587_v62 }
 0x199   : > { %686 = vmatpush.bf16.msrb.mxu1 %v586_v0  ;;  %1006 = vmatpush.bf16.msra.mxu2 %v586_v0 }
 0x19a   : > { %1007 = vmatpush.bf16.msra.mxu3 %v586_v0 }
 0x19c   : > { %904 = vmatmul.msk.bf16.vlgmr.msrb.gmra.mxu1 %vm666_vm1, %v916_v1  ;;  %905 = vmatmul.msk.bf16.vlgmr.msra.gmra.mxu2 %vm666_vm1, %v917_v2 }
 0x19d   : > { %906 = vmatmul.msk.bf16.vlgmr.msra.gmra.mxu3 %vm666_vm1, %v918_v3 }
 0x1ad   : > { %907 = vmatmul.msk.bf16.gmra.mxu3 %vm666_vm1, %v919_v4 }
 0x219   : > { %v688_v13 = vpop.f32.mrf.mxu1 }
 0x21a   : > { %v689_v35 = vadd.f32 %v688_v13, %v609_v34 }
 0x21c   : > { %v724_v39 = vmax.f32 %v689_v35, 0.0 }
 0x21f   : > { %v693_v11 = vpop.f32.mrf.mxu2 }
 0x220   : > { %v698_v5 = vpop.f32.mrf.mxu3  ;;  %v694_v28 = vadd.f32 %v693_v11, %v619_v16 }
 0x221   : > { %v699_v21 = vadd.f32 %v698_v5, %v629_v10  ;;  %v690_v27 = vpop.f32.mrf.mxu1 }
 0x222   : > { %v691_v31 = vadd.f32 %v690_v27, %v614_v30  ;;  %v726_v36 = vmax.f32 %v694_v28, 0.0 }
 0x223   : > { %v728_v29 = vmax.f32 %v699_v21, 0.0 }
 0x224   : > { %v725_v37 = vmax.f32 %v691_v31, 0.0 }
 0x226   : > { %v732_v40 = vpack.c.bf16 %v725_v37, %v724_v39 }
 0x227   : > { %v695_v20 = vpop.f32.mrf.mxu2 }
 0x228   : > { %v700_v8 = vpop.f32.mrf.mxu3  ;;  %v696_v24 = vadd.f32 %v695_v20, %v624_v14 }
 0x229   : > { %v701_v18 = vadd.f32 %v700_v8, %v634_v9 }
 0x22a   : > { %v727_v32 = vmax.f32 %v696_v24, 0.0 }
 0x22b   : > { %v729_v25 = vmax.f32 %v701_v18, 0.0 }
 0x22c   : > { %v733_v38 = vpack.c.bf16 %v727_v32, %v726_v36 }
 0x22d   : > { %v734_v33 = vpack.c.bf16 %v729_v25, %v728_v29 }
 0x230   : > { %v703_v12 = vpop.f32.mrf.mxu3 }
 0x231   : > { %v704_v15 = vadd.f32 %v703_v12, %v639_v7 }
 0x233   : > { %v730_v22 = vmax.f32 %v704_v15, 0.0 }
 0x238   : > { %v705_v17 = vpop.f32.mrf.mxu3 }
 0x239   : > { %v706_v19 = vadd.f32 %v705_v17, %v644_v6 }
 0x23b   : > { %v731_v23 = vmax.f32 %v706_v19, 0.0 }
 0x23d   : > { %v735_v26 = vpack.c.bf16 %v731_v23, %v730_v22 }
 0x23f   : > { %751 = vmatpush.bf16.msrb.mxu2 %v735_v26 }
 0x243   : > { %752 = vmatpush.bf16.msrb.mxu2 %v734_v33 }
 0x247   : > { %753 = vmatpush.bf16.msrb.mxu2 %v733_v38 }
 0x24b   : > { %754 = vmatpush.bf16.msrb.mxu2 %v732_v40 }
 0x24e   : > { %908 = vmatmul.msk.bf16.vlgmr.msrb.gmra.mxu2 %vm666_vm1, %v736_v41 }
 0x2d1   : > { %v756_v44 = vpop.f32.mrf.mxu2 }
 0x2d2   : > { %v757_v45 = vadd.f32 %v756_v44, %v743_v43 }
 0x2d4   : > { %v909_v46 = vmul.f32 -1.442695, %v757_v45 }
 0x2d6   : > { %1051 = vpow2.f32 %v909_v46 }
 0x2d9   : > { %v758_v47 = vpop.f32.mrf.mxu2 }
 0x2dc   : > { %v1052_v48 = vpop.eup %1051 }
 0x2dd   : > { %v763_v49 = vadd.f32 1.0, %v1052_v48 }
 0x2df   : > { %1053 = vrcp.f32 %v763_v49  ;;  %v775_v53 = vand.u32 2147483648, %v763_v49  ;;  %v773_v55 = vand.u32 2147483647, %v763_v49  ;;  %vm769_vm3 = vweird.f32 %v763_v49 }
 0x2e1   : > { %v776_v57 = vor.u32 1.1754944e-38, %v775_v53  ;;  %vm774_vm5 = vcmp.eq.f32.partialorder %v773_v55, 8.507059e+37 }
 0x2e5   : > { %v1054_v50 = vpop.eup %1053 }
 0x2e6   : > { %v765_v51 = vmul.f32 %v1054_v50, %v763_v49  ;;  %vm770_vm2 = vweird.f32 %v1054_v50 }
 0x2e7   : > { %vm771_vm4 = vmor %vm769_vm3, %vm770_vm2 }
 0x2e8   : > { %v766_v52 = vsub.f32 1.0, %v765_v51 }
 0x2ea   : > { %v767_v54 = vmul.f32 %v1054_v50, %v766_v52 }
 0x2ec   : > { %v768_v56 = vadd.f32 %v1054_v50, %v767_v54 }
 0x2ee   : > { %v772_v58 = vsel %vm771_vm4, %v1054_v50, %v768_v56 }
 0x2ef   : > { %v777_v59 = vsel %vm774_vm5, %v776_v57, %v772_v58 }
 0x2f0   : > { %779 = vst [vmem:[%s316_s24] sm:$0x1] %v777_v59 }
 0x2f1   : > { %1082 = shalt.err (!%p1079_p3)
}
 0x2f2   : > { %1008 = dma.vmem_to_hbm [thread:$0]  (%p1206_p5), %s792_s25, 16, %s794_s26, %s781_s27  }
 0x2f3 PF: > { %p1014_p4 = scmp.ge.s32.totalorder %s1117_s10, 2  ;;  %s805_s20 = sand.u32 1, %s1105_s29  }
 0x2f4   : > { %s806_s21 = scalar_lea.sflag [#allocation4], %s805_s20 }
 0x2f5   : > { %p1011_p7 = pnand %p1014_p4, %p1210_p6 }
 0x2f7   : > { %p1012_p8 = pneg %p1011_p7 }
 0x2f9   : > { %1100 = dma.done.wait (%p1012_p8), %s806_s21, 16  }
 0x2fa   : > { %1102 = vsyncadd (%p1012_p8), %s806_s21, 4294967280  ;;  %p20_p9 = scmp.ge.s32.totalorder %s1193_s12, 4   ;;  %s1370_s29 = smov %s1109_s30 }
 0x2fb   : > { %s1371_s30 = smov %s1113_s9  ;;  %s1372_s9 = smov %s1204_s15 }
 0x2fc   : > { %s1373_s10 = smov %s1193_s12  ;;  %22 = sbr.rel (!%p20_p9) target bundleno = 6 (0x6), region = 90 }
 0x301   :  { %811 = vsyncpa [#allocation4], 1 }
 0x302   :  { %813 = vsyncpa [#allocation4 + $0x1], 1 }

</bundles_post_ra>
